<compile_context>
chip_gen: v7x
topology: tpu7x:2x2x1
jax: 0.10.0
libtpu: 0.0.40
codegen_flags: <defaults>
</compile_context>

<pallas_src>
import functools

import jax
import jax.numpy as jnp
from jax.experimental import pallas as pl
from jax.experimental.pallas import tpu as pltpu


def _mse_kernel(pred_ref, label_ref, out_ref, acc_ref, *, true_d, tile_d, rem):
    """Accumulate per-row sum of squared differences over the D axis.

    Grid: axis 0 = batch tiles ("parallel"), axis 1 = D tiles ("arbitrary",
    reduction, innermost).  acc_ref is a (tile_n, 128) VMEM scratch of
    per-lane partial sums that persists across the D axis; it is collapsed to
    one column only in the last-tile epilogue.
    """
    j = pl.program_id(1)
    last_j = pl.num_programs(1) - 1
    n_chunks = tile_d // 128

    @pl.when(j == 0)
    def _():
        acc_ref[...] = jnp.zeros_like(acc_ref)

    def accum_chunk(c, valid_lanes=None):
        # Stream per 128-lane chunk: slice the *refs* (static slices), so only
        # ~one chunk of p/l/d is live at a time and vreg pressure stays flat
        # even for very wide D tiles.
        lo = c * 128
        p = pred_ref[:, lo:lo + 128].astype(jnp.float32)
        l = label_ref[:, lo:lo + 128].astype(jnp.float32)
        d = p - l
        if valid_lanes is not None:
            lane = jax.lax.broadcasted_iota(jnp.int32, d.shape, 1)
            d = jnp.where(lane < valid_lanes, d, 0.0)
        acc_ref[...] += d * d

    if rem == 0:
        # Every D tile is full: no masking anywhere.
        for c in range(n_chunks):
            accum_chunk(c)
    else:
        # Ragged D: pay the mask only on the last D tile, and only on the one
        # partially valid 128-lane chunk; fully invalid chunks are skipped.
        @pl.when(j != last_j)
        def _():
            for c in range(n_chunks):
                accum_chunk(c)

        @pl.when(j == last_j)
        def _():
            full = rem // 128
            for c in range(full):
                accum_chunk(c)
            if rem % 128 != 0:
                accum_chunk(full, valid_lanes=rem % 128)

    @pl.when(j == last_j)
    def _():
        # Single cross-lane reduce + scale + narrow store, once per batch
        # tile.  Output traffic is only N*4 bytes total, so the lane-masked
        # (tile_n, 1) store is negligible (flagged, intentionally left as-is).
        total = jnp.sum(acc_ref[...], axis=-1, keepdims=True)
        out_ref[...] = (total * (1.0 / float(true_d))).astype(out_ref.dtype)


def _vmem_capacity_bytes():
    """Best-effort physical VMEM size; conservative (v7x, 64 MiB) fallback."""
    try:
        cap = getattr(pltpu.get_tpu_info(), "vmem_capacity_bytes", None)
        if cap:
            return int(cap)
    except Exception:
        pass
    return 64 * 1024 * 1024


def mse_loss(pred, label):
    """Per-sample MSE: mean((pred - label)**2) over all non-batch dims.

    pred:  (N, ...) array (e.g. NCHW images).
    label: any shape with the same number of elements (torch's
           label.view(pred.size())).
    returns: (N,) float32 per-sample loss.
    """
    pred = jnp.asarray(pred)
    # label.view(pred.size()); NO dtype cast here -- the kernel casts to f32
    # per chunk, so bf16 inputs stream at half the HBM bytes.
    label = jnp.reshape(jnp.asarray(label), pred.shape)

    n = pred.shape[0]
    true_d = 1
    for s in pred.shape[1:]:
        true_d *= s

    pred2 = pred.reshape(n, true_d)
    label2 = label.reshape(n, true_d)
    itemsize = jnp.dtype(pred2.dtype).itemsize

    # ---- Generation-aware VMEM budget --------------------------------------
    # v5e/v6e (128 MiB physical): ~40 MiB of double-buffered input blocks,
    # 80 MiB scoped limit.  v7x / unknown (64 MiB per core): ~24 MiB of input
    # blocks under a 48 MiB limit to preserve pipelining headroom.
    vmem_cap = _vmem_capacity_bytes()
    if vmem_cap >= 96 * 1024 * 1024:
        max_buf_bytes = 40 * 1024 * 1024
        vmem_limit = 80 * 1024 * 1024
    else:
        max_buf_bytes = 24 * 1024 * 1024
        vmem_limit = 48 * 1024 * 1024

    # ---- N tile: free choice (ragged batch blocks handled by BlockSpec) ----
    n_cap = ((n + 7) // 8) * 8                 # sublane granule
    tile_n = min(n_cap, 128)                   # cap keeps per-chunk vreg use low
    if n >= 16:
        # Guarantee >= 2 batch tiles so dimension_semantics="parallel" can
        # spread work over both TensorCores on v7x (no effect on v5e/v6e).
        tile_n = min(tile_n, max(8, ((n_cap // 2) // 8) * 8))

    # ---- D tile: grow toward D (rounded up to 128) until a budget is hit ---
    d_cap = ((true_d + 127) // 128) * 128
    # (a) VMEM: 2 inputs x 2 pipeline buffers within the generation budget.
    budget_d = (max_buf_bytes // (4 * tile_n * itemsize)) // 128 * 128
    # (b) code size: the chunk loop is statically unrolled; bound the unrolled
    #     work to ~512 vreg-chunks per grid step (>= multi-MiB input DMA per
    #     step, ~85%+ of HBM roofline, modest compile time).
    unroll_d = max(8, 512 // max(1, tile_n // 8)) * 128
    tile_d = max(128, min(d_cap, budget_d, unroll_d))

    num_d_tiles = pl.cdiv(true_d, tile_d)
    rem = true_d % tile_d                      # 0 => all D tiles are full
    grid = (pl.cdiv(n, tile_n), num_d_tiles)

    kernel = functools.partial(_mse_kernel, true_d=true_d, tile_d=tile_d, rem=rem)

    out = pl.pallas_call(
        kernel,
        out_shape=jax.ShapeDtypeStruct((n, 1), jnp.float32),
        grid_spec=pltpu.PrefetchScalarGridSpec(
            num_scalar_prefetch=0,
            grid=grid,
            in_specs=[
                pl.BlockSpec((tile_n, tile_d), lambda i, j: (i, j)),
                pl.BlockSpec((tile_n, tile_d), lambda i, j: (i, j)),
            ],
            out_specs=pl.BlockSpec((tile_n, 1), lambda i, j: (i, 0)),
            scratch_shapes=[pltpu.VMEM((tile_n, 128), jnp.float32)],
        ),
        compiler_params=pltpu.CompilerParams(
            dimension_semantics=("parallel", "arbitrary"),
            vmem_limit_bytes=vmem_limit,
        ),
    )(pred2, label2)

    return out.reshape(n)


def _ref_mse(pred, label):
    label = label.reshape(pred.shape)
    axes = tuple(range(1, pred.ndim))
    return jnp.mean((pred.astype(jnp.float32) - label.astype(jnp.float32)) ** 2,
                    axis=axes)


if __name__ == "__main__":
    key = jax.random.PRNGKey(0)
    k1, k2, k3, k4, k5, k6, k7, k8, k9, k10 = jax.random.split(key, 10)

    # Case 1: NCHW inputs (image-harmonization MSE), D divisible by 128.
    pred1 = jax.random.normal(k1, (2, 4, 16, 16), dtype=jnp.float32)
    label1 = jax.random.normal(k2, (2, 4 * 16 * 16), dtype=jnp.float32)
    loss1 = jax.block_until_ready(mse_loss(pred1, label1))
    ref1 = _ref_mse(pred1, label1)
    assert loss1.shape == (2,)
    assert jnp.allclose(loss1, ref1, rtol=1e-5, atol=1e-6), (loss1, ref1)

    # Case 2: ragged D (315) and ragged N (3) -> in-kernel lane mask + padded rows.
    pred2 = jax.random.normal(k3, (3, 5, 7, 9), dtype=jnp.float32)
    label2 = jax.random.normal(k4, (3, 5 * 7 * 9), dtype=jnp.float32)
    loss2 = jax.block_until_ready(mse_loss(pred2, label2))
    ref2 = _ref_mse(pred2, label2)
    assert jnp.allclose(loss2, ref2, rtol=1e-5, atol=1e-6), (loss2, ref2)

    # Case 3: multi-chunk D, multi-row batch.
    pred3 = jax.random.normal(k5, (4, 3, 32, 32), dtype=jnp.float32)
    label3 = jax.random.normal(k6, (4, 3, 32, 32), dtype=jnp.float32)
    loss3 = jax.block_until_ready(mse_loss(pred3, label3))
    ref3 = _ref_mse(pred3, label3)
    assert jnp.allclose(loss3, ref3, rtol=1e-5, atol=1e-6), (loss3, ref3)

    # Case 4: N >= 16 -> >= 2 batch tiles (megacore path) with ragged last tile.
    pred4 = jax.random.normal(k7, (18, 3, 16, 16), dtype=jnp.float32)
    label4 = jax.random.normal(k8, (18, 3, 16, 16), dtype=jnp.float32)
    loss4 = jax.block_until_ready(mse_loss(pred4, label4))
    ref4 = _ref_mse(pred4, label4)
    assert jnp.allclose(loss4, ref4, rtol=1e-5, atol=1e-6), (loss4, ref4)

    # Case 5: bf16 inputs stream at native width, f32 accumulation in-kernel.
    pred5 = jax.random.normal(k9, (4, 3, 32, 32), dtype=jnp.bfloat16)
    label5 = jax.random.normal(k10, (4, 3, 32, 32), dtype=jnp.bfloat16)
    loss5 = jax.block_until_ready(mse_loss(pred5, label5))
    ref5 = _ref_mse(pred5, label5)
    assert jnp.allclose(loss5, ref5, rtol=1e-3, atol=1e-5), (loss5, ref5)

    print("KERNEL_OK")
</pallas_src>

<mosaic_0001>
module attributes {stable_mosaic.version = 11 : i64} {
  func.func @_mse_kernel(%arg0: i32, %arg1: i32, %arg2: memref<8x1024xf32, #tpu.memory_space<vmem>>, %arg3: memref<8x1024xf32, #tpu.memory_space<vmem>>, %arg4: memref<8x1xf32, #tpu.memory_space<vmem>>, %arg5: memref<8x128xf32, #tpu.memory_space<vmem>>) attributes {dimension_semantics = [#tpu.dimension_semantics<parallel>, #tpu.dimension_semantics<arbitrary>], iteration_bounds = array<i64: 1, 1>, scalar_prefetch = 0 : i64, scratch_operands = 1 : i64, tpu.core_type = #tpu.core_type<tc>, window_params = [{transform_indices = @transform_0, window_bounds = array<i64: 8, 1024>}, {transform_indices = @transform_1, window_bounds = array<i64: 8, 1024>}, {transform_indices = @transform_2, window_bounds = array<i64: 8, 1>}]} {
    %c0_i32 = arith.constant 0 : i32
    %0 = arith.cmpi eq, %arg1, %c0_i32 : i32
    %1 = arith.extui %0 : i1 to i32
    %c0_i32_0 = arith.constant 0 : i32
    %2 = arith.cmpi ne, %1, %c0_i32_0 : i32
    scf.if %2 {
      %cst = arith.constant 0.000000e+00 : f32
      %62 = vector.broadcast %cst : f32 to vector<8x128xf32>
      %c0_59 = arith.constant 0 : index
      %c0_60 = arith.constant 0 : index
      %63 = vector.load %arg5[%c0_59, %c0_60] : memref<8x128xf32, #tpu.memory_space<vmem>>, vector<8x128xf32>
      tpu.vector_store %arg5[%c0_59, %c0_60], %62 {strides = array<i32>} : memref<8x128xf32, #tpu.memory_space<vmem>>, vector<8x128xf32>,
    } else {
    }
    %c0 = arith.constant 0 : index
    %c0_1 = arith.constant 0 : index
    %3 = vector.load %arg2[%c0, %c0_1] : memref<8x1024xf32, #tpu.memory_space<vmem>>, vector<8x128xf32>
    %c0_2 = arith.constant 0 : index
    %c0_3 = arith.constant 0 : index
    %4 = vector.load %arg3[%c0_2, %c0_3] : memref<8x1024xf32, #tpu.memory_space<vmem>>, vector<8x128xf32>
    %5 = arith.subf %3, %4 : vector<8x128xf32>
    %c0_4 = arith.constant 0 : index
    %c0_5 = arith.constant 0 : index
    %6 = vector.load %arg5[%c0_4, %c0_5] : memref<8x128xf32, #tpu.memory_space<vmem>>, vector<8x128xf32>
    %7 = arith.mulf %5, %5 : vector<8x128xf32>
    %8 = arith.addf %6, %7 : vector<8x128xf32>
    %c0_6 = arith.constant 0 : index
    %c0_7 = arith.constant 0 : index
    %9 = vector.load %arg5[%c0_6, %c0_7] : memref<8x128xf32, #tpu.memory_space<vmem>>, vector<8x128xf32>
    tpu.vector_store %arg5[%c0_6, %c0_7], %8 {strides = array<i32>} : memref<8x128xf32, #tpu.memory_space<vmem>>, vector<8x128xf32>,
    %c0_8 = arith.constant 0 : index
    %c128 = arith.constant 128 : index
    %10 = vector.load %arg2[%c0_8, %c128] : memref<8x1024xf32, #tpu.memory_space<vmem>>, vector<8x128xf32>
    %c0_9 = arith.constant 0 : index
    %c128_10 = arith.constant 128 : index
    %11 = vector.load %arg3[%c0_9, %c128_10] : memref<8x1024xf32, #tpu.memory_space<vmem>>, vector<8x128xf32>
    %12 = arith.subf %10, %11 : vector<8x128xf32>
    %c0_11 = arith.constant 0 : index
    %c0_12 = arith.constant 0 : index
    %13 = vector.load %arg5[%c0_11, %c0_12] : memref<8x128xf32, #tpu.memory_space<vmem>>, vector<8x128xf32>
    %14 = arith.mulf %12, %12 : vector<8x128xf32>
    %15 = arith.addf %13, %14 : vector<8x128xf32>
    %c0_13 = arith.constant 0 : index
    %c0_14 = arith.constant 0 : index
    %16 = vector.load %arg5[%c0_13, %c0_14] : memref<8x128xf32, #tpu.memory_space<vmem>>, vector<8x128xf32>
    tpu.vector_store %arg5[%c0_13, %c0_14], %15 {strides = array<i32>} : memref<8x128xf32, #tpu.memory_space<vmem>>, vector<8x128xf32>,
    %c0_15 = arith.constant 0 : index
    %c256 = arith.constant 256 : index
    %17 = vector.load %arg2[%c0_15, %c256] : memref<8x1024xf32, #tpu.memory_space<vmem>>, vector<8x128xf32>
    %c0_16 = arith.constant 0 : index
    %c256_17 = arith.constant 256 : index
    %18 = vector.load %arg3[%c0_16, %c256_17] : memref<8x1024xf32, #tpu.memory_space<vmem>>, vector<8x128xf32>
    %19 = arith.subf %17, %18 : vector<8x128xf32>
    %c0_18 = arith.constant 0 : index
    %c0_19 = arith.constant 0 : index
    %20 = vector.load %arg5[%c0_18, %c0_19] : memref<8x128xf32, #tpu.memory_space<vmem>>, vector<8x128xf32>
    %21 = arith.mulf %19, %19 : vector<8x128xf32>
    %22 = arith.addf %20, %21 : vector<8x128xf32>
    %c0_20 = arith.constant 0 : index
    %c0_21 = arith.constant 0 : index
    %23 = vector.load %arg5[%c0_20, %c0_21] : memref<8x128xf32, #tpu.memory_space<vmem>>, vector<8x128xf32>
    tpu.vector_store %arg5[%c0_20, %c0_21], %22 {strides = array<i32>} : memref<8x128xf32, #tpu.memory_space<vmem>>, vector<8x128xf32>,
    %c0_22 = arith.constant 0 : index
    %c384 = arith.constant 384 : index
    %24 = vector.load %arg2[%c0_22, %c384] : memref<8x1024xf32, #tpu.memory_space<vmem>>, vector<8x128xf32>
    %c0_23 = arith.constant 0 : index
    %c384_24 = arith.constant 384 : index
    %25 = vector.load %arg3[%c0_23, %c384_24] : memref<8x1024xf32, #tpu.memory_space<vmem>>, vector<8x128xf32>
    %26 = arith.subf %24, %25 : vector<8x128xf32>
    %c0_25 = arith.constant 0 : index
    %c0_26 = arith.constant 0 : index
    %27 = vector.load %arg5[%c0_25, %c0_26] : memref<8x128xf32, #tpu.memory_space<vmem>>, vector<8x128xf32>
    %28 = arith.mulf %26, %26 : vector<8x128xf32>
    %29 = arith.addf %27, %28 : vector<8x128xf32>
    %c0_27 = arith.constant 0 : index
    %c0_28 = arith.constant 0 : index
    %30 = vector.load %arg5[%c0_27, %c0_28] : memref<8x128xf32, #tpu.memory_space<vmem>>, vector<8x128xf32>
    tpu.vector_store %arg5[%c0_27, %c0_28], %29 {strides = array<i32>} : memref<8x128xf32, #tpu.memory_space<vmem>>, vector<8x128xf32>,
    %c0_29 = arith.constant 0 : index
    %c512 = arith.constant 512 : index
    %31 = vector.load %arg2[%c0_29, %c512] : memref<8x1024xf32, #tpu.memory_space<vmem>>, vector<8x128xf32>
    %c0_30 = arith.constant 0 : index
    %c512_31 = arith.constant 512 : index
    %32 = vector.load %arg3[%c0_30, %c512_31] : memref<8x1024xf32, #tpu.memory_space<vmem>>, vector<8x128xf32>
    %33 = arith.subf %31, %32 : vector<8x128xf32>
    %c0_32 = arith.constant 0 : index
    %c0_33 = arith.constant 0 : index
    %34 = vector.load %arg5[%c0_32, %c0_33] : memref<8x128xf32, #tpu.memory_space<vmem>>, vector<8x128xf32>
    %35 = arith.mulf %33, %33 : vector<8x128xf32>
    %36 = arith.addf %34, %35 : vector<8x128xf32>
    %c0_34 = arith.constant 0 : index
    %c0_35 = arith.constant 0 : index
    %37 = vector.load %arg5[%c0_34, %c0_35] : memref<8x128xf32, #tpu.memory_space<vmem>>, vector<8x128xf32>
    tpu.vector_store %arg5[%c0_34, %c0_35], %36 {strides = array<i32>} : memref<8x128xf32, #tpu.memory_space<vmem>>, vector<8x128xf32>,
    %c0_36 = arith.constant 0 : index
    %c640 = arith.constant 640 : index
    %38 = vector.load %arg2[%c0_36, %c640] : memref<8x1024xf32, #tpu.memory_space<vmem>>, vector<8x128xf32>
    %c0_37 = arith.constant 0 : index
    %c640_38 = arith.constant 640 : index
    %39 = vector.load %arg3[%c0_37, %c640_38] : memref<8x1024xf32, #tpu.memory_space<vmem>>, vector<8x128xf32>
    %40 = arith.subf %38, %39 : vector<8x128xf32>
    %c0_39 = arith.constant 0 : index
    %c0_40 = arith.constant 0 : index
    %41 = vector.load %arg5[%c0_39, %c0_40] : memref<8x128xf32, #tpu.memory_space<vmem>>, vector<8x128xf32>
    %42 = arith.mulf %40, %40 : vector<8x128xf32>
    %43 = arith.addf %41, %42 : vector<8x128xf32>
    %c0_41 = arith.constant 0 : index
    %c0_42 = arith.constant 0 : index
    %44 = vector.load %arg5[%c0_41, %c0_42] : memref<8x128xf32, #tpu.memory_space<vmem>>, vector<8x128xf32>
    tpu.vector_store %arg5[%c0_41, %c0_42], %43 {strides = array<i32>} : memref<8x128xf32, #tpu.memory_space<vmem>>, vector<8x128xf32>,
    %c0_43 = arith.constant 0 : index
    %c768 = arith.constant 768 : index
    %45 = vector.load %arg2[%c0_43, %c768] : memref<8x1024xf32, #tpu.memory_space<vmem>>, vector<8x128xf32>
    %c0_44 = arith.constant 0 : index
    %c768_45 = arith.constant 768 : index
    %46 = vector.load %arg3[%c0_44, %c768_45] : memref<8x1024xf32, #tpu.memory_space<vmem>>, vector<8x128xf32>
    %47 = arith.subf %45, %46 : vector<8x128xf32>
    %c0_46 = arith.constant 0 : index
    %c0_47 = arith.constant 0 : index
    %48 = vector.load %arg5[%c0_46, %c0_47] : memref<8x128xf32, #tpu.memory_space<vmem>>, vector<8x128xf32>
    %49 = arith.mulf %47, %47 : vector<8x128xf32>
    %50 = arith.addf %48, %49 : vector<8x128xf32>
    %c0_48 = arith.constant 0 : index
    %c0_49 = arith.constant 0 : index
    %51 = vector.load %arg5[%c0_48, %c0_49] : memref<8x128xf32, #tpu.memory_space<vmem>>, vector<8x128xf32>
    tpu.vector_store %arg5[%c0_48, %c0_49], %50 {strides = array<i32>} : memref<8x128xf32, #tpu.memory_space<vmem>>, vector<8x128xf32>,
    %c0_50 = arith.constant 0 : index
    %c896 = arith.constant 896 : index
    %52 = vector.load %arg2[%c0_50, %c896] : memref<8x1024xf32, #tpu.memory_space<vmem>>, vector<8x128xf32>
    %c0_51 = arith.constant 0 : index
    %c896_52 = arith.constant 896 : index
    %53 = vector.load %arg3[%c0_51, %c896_52] : memref<8x1024xf32, #tpu.memory_space<vmem>>, vector<8x128xf32>
    %54 = arith.subf %52, %53 : vector<8x128xf32>
    %c0_53 = arith.constant 0 : index
    %c0_54 = arith.constant 0 : index
    %55 = vector.load %arg5[%c0_53, %c0_54] : memref<8x128xf32, #tpu.memory_space<vmem>>, vector<8x128xf32>
    %56 = arith.mulf %54, %54 : vector<8x128xf32>
    %57 = arith.addf %55, %56 : vector<8x128xf32>
    %c0_55 = arith.constant 0 : index
    %c0_56 = arith.constant 0 : index
    %58 = vector.load %arg5[%c0_55, %c0_56] : memref<8x128xf32, #tpu.memory_space<vmem>>, vector<8x128xf32>
    tpu.vector_store %arg5[%c0_55, %c0_56], %57 {strides = array<i32>} : memref<8x128xf32, #tpu.memory_space<vmem>>, vector<8x128xf32>,
    %c0_i32_57 = arith.constant 0 : i32
    %59 = arith.cmpi eq, %arg1, %c0_i32_57 : i32
    %60 = arith.extui %59 : i1 to i32
    %c0_i32_58 = arith.constant 0 : i32
    %61 = arith.cmpi ne, %60, %c0_i32_58 : i32
    scf.if %61 {
      %c0_59 = arith.constant 0 : index
      %c0_60 = arith.constant 0 : index
      %62 = vector.load %arg5[%c0_59, %c0_60] : memref<8x128xf32, #tpu.memory_space<vmem>>, vector<8x128xf32>
      %cst = arith.constant dense<0.000000e+00> : vector<8xf32>
      %63 = vector.multi_reduction <add>, %62, %cst [1] : vector<8x128xf32> to vector<8xf32>
      %64 = vector.shape_cast %63 : vector<8xf32> to vector<8x1xf32>
      %cst_61 = arith.constant 9.765625E-4 : f32
      %65 = vector.broadcast %cst_61 : f32 to vector<8x1xf32>
      %66 = arith.mulf %64, %65 : vector<8x1xf32>
      %c0_62 = arith.constant 0 : index
      %c0_63 = arith.constant 0 : index
      %67 = vector.load %arg4[%c0_62, %c0_63] : memref<8x1xf32, #tpu.memory_space<vmem>>, vector<8x1xf32>
      tpu.vector_store %arg4[%c0_62, %c0_63], %66 {strides = array<i32>} : memref<8x1xf32, #tpu.memory_space<vmem>>, vector<8x1xf32>,
    } else {
    }
    return
  }
  func.func @transform_0(%arg0: i32, %arg1: i32) -> (i32, i32) {
    %c0_i32 = arith.constant 0 : i32
    return %arg0, %arg1 : i32, i32
  }
  func.func @transform_1(%arg0: i32, %arg1: i32) -> (i32, i32) {
    %c0_i32 = arith.constant 0 : i32
    return %arg0, %arg1 : i32, i32
  }
  func.func @transform_2(%arg0: i32, %arg1: i32) -> (i32, i32) {
    %c0_i32 = arith.constant 0 : i32
    %c0_i32_0 = arith.constant 0 : i32
    return %arg0, %c0_i32 : i32, i32
  }
}

</mosaic_0001>

<bundles_post_ra>
// kernel: tpu_custom_call.1
= control target key start
LH: loop header
LB: loop body
LE: loop exit
PB: predicated region body
PF: predicated region fallthrough
CT: control target
= control target key end

     0   :  { %7 = vsyncpa [#allocation4], 0  ;;  %s540_s0 = inlined_call_operand.hbm [shape: f32[2,1024], index: 0, kind: input, shape index: {}]   ;;  %s541_s1 = inlined_call_operand.hbm [shape: f32[2,1024], index: 1, kind: input, shape index: {}]   ;;  %s542_s2 = inlined_call_operand.vmem [shape: f32[2,1], index: 2, kind: output, shape index: {}]  }
   0x1   :  { %8 = vsyncpa [#allocation6], 0 }
   0x2   :  { %13 = vsyncadd [#allocation4], 768  ;;  %s475_s9 = smov [#allocation3]   ;;  %s427_s13 = scalar_lea.hbm %s540_s0, 256 }
   0x3   :  { %s14_s10 = sshll.u32 %s475_s9, 4  ;;  %p428_p0 = scmp.ne.s32.totalorder %s540_s0, %s427_s13  ;;  %s15_s10 = int_to_ptr.vmem [resolvable:$true] %s14_s10 }
   0x4   :  { %p431_p1 = scmp.lt.u32.totalorder %s427_s13, %s540_s0 }
   0x6   :  { %p433_p2 = pnand %p431_p1, %p428_p0 }
   0x8   :  { %436 = shalt.err (!%p433_p2)
}
   0x9   :  { %s437_s18 = scalar_lea.vmem %s15_s10, 256  ;;  %s441_s19 = scalar_lea.vmem %s15_s10, 1024 }
   0xa   :  { %p438_p3 = scmp.ne.s32.totalorder %s15_s10, %s437_s18  ;;  %p442_p4 = scmp.lt.s32.totalorder %s15_s10, %s15_s10 }
   0xb   :  { %p443_p5 = scmp.lt.s32.totalorder %s441_s19, %s437_s18 }
   0xd   :  { %p444_p6 = por %p443_p5, %p442_p4 }
   0xf   :  { %p445_p7 = pnand %p444_p6, %p438_p3 }
  0x11   :  { %448 = shalt.err (!%p445_p7)
}
  0x12   :  { %s476_s20 = smov 256   ;;  %s477_s21 = smov 16  }
  0x13   :  { %20 = dma.hbm_to_vmem [thread:$0]  %s540_s0, 256, %s15_s10, [#allocation4], %s476_s20, %s476_s20, %s477_s21  }
  0x14   :  { %25 = vsyncadd [#allocation6], 768  ;;  %s478_s24 = smov [#allocation5]   ;;  %s449_s28 = scalar_lea.hbm %s541_s1, 256 }
  0x15   :  { %s26_s25 = sshll.u32 %s478_s24, 4  ;;  %p450_p8 = scmp.ne.s32.totalorder %s541_s1, %s449_s28  ;;  %s27_s25 = int_to_ptr.vmem [resolvable:$true] %s26_s25 }
  0x16   :  { %p453_p9 = scmp.lt.u32.totalorder %s449_s28, %s541_s1 }
  0x18   :  { %p455_p10 = pnand %p453_p9, %p450_p8 }
  0x1a   :  { %458 = shalt.err (!%p455_p10)
}
  0x1b   :  { %s459_s5 = scalar_lea.vmem %s27_s25, 256  ;;  %s463_s0 = scalar_lea.vmem %s27_s25, 1024 }
  0x1c   :  { %p460_p11 = scmp.ne.s32.totalorder %s27_s25, %s459_s5  ;;  %p464_p12 = scmp.lt.s32.totalorder %s27_s25, %s27_s25 }
  0x1d   :  { %p465_p13 = scmp.lt.s32.totalorder %s463_s0, %s459_s5 }
  0x1f   :  { %p466_p0 = por %p465_p13, %p464_p12 }
  0x21   :  { %p467_p1 = pnand %p466_p0, %p460_p11 }
  0x23   :  { %470 = shalt.err (!%p467_p1)
}
  0x24   :  { %32 = dma.hbm_to_vmem [thread:$0]  %s541_s1, 256, %s27_s25, [#allocation6], %s476_s20, %s476_s20, %s477_s21  }
  0x25   :  { %471 = dma.done.wait [#allocation4], 1024  }
  0x26   :  { %472 = vsyncadd [#allocation4], 4294966272 }
  0x27   :  { %473 = dma.done.wait [#allocation6], 1024  }
  0x28   :  { %474 = vsyncadd [#allocation6], 4294966272  ;;  %v70_v0 = vlaneseq  ;;  %v479_v1 = vmov 1983009808   ;;  %v44_v4 = vld [vmem:[#allocation3] sm:$0x3] }
  0x29   :  { %v68_v2 = vunpack.c.l.s4 %v479_v1  ;;  %v45_v5 = vld [vmem:[#allocation3 + $0x10] sm:$0x3]  ;;  %v46_v6 = vld [vmem:[#allocation3 + $0x20] sm:$0x3]  ;;  %v85_v15 = vld [vmem:[#allocation3 + $0x2] sm:$0x3] }
  0x2a   :  { %v71_v3 = vshrl.u32 %v70_v0, 7  ;;  %v47_v8 = vld [vmem:[#allocation3 + $0x30] sm:$0x3]  ;;  %v48_v9 = vld [vmem:[#allocation5] sm:$0x3]  ;;  %vm379_vm0 = vcmask 7168  }
  0x2b   :  { %v69_v7 = vunpack.c.0.s8 %v68_v2  ;;  %v49_v10 = vld [vmem:[#allocation5 + $0x10] sm:$0x3]  ;;  %v50_v11 = vld [vmem:[#allocation5 + $0x20] sm:$0x3]  ;;  %v52_v13 = vsub.f32 %v44_v4, %v48_v9  ;;  %v86_v18 = vld [vmem:[#allocation3 + $0x12] sm:$0x3] }
  0x2c   :  { %v51_v12 = vld [vmem:[#allocation5 + $0x30] sm:$0x3]  ;;  %v53_v14 = vsub.f32 %v45_v5, %v49_v10  ;;  %v54_v16 = vsub.f32 %v46_v6, %v50_v11  ;;  %v87_v19 = vld [vmem:[#allocation3 + $0x22] sm:$0x3]  ;;  %v88_v20 = vld [vmem:[#allocation3 + $0x32] sm:$0x3] }
  0x2d   :  { %v55_v17 = vsub.f32 %v47_v8, %v51_v12  ;;  %v57_v21 = vmul.f32 %v52_v13, %v52_v13  ;;  %v519_v23 = vsub.s32 %v69_v7, %v71_v3  ;;  %v89_v24 = vld [vmem:[#allocation5 + $0x2] sm:$0x3]  ;;  %v90_v25 = vld [vmem:[#allocation5 + $0x12] sm:$0x3]  ;;  %v126_v32 = vld [vmem:[#allocation3 + $0x4] sm:$0x3] }
  0x2e   :  { %v58_v22 = vmul.f32 %v53_v14, %v53_v14  ;;  %v91_v26 = vld [vmem:[#allocation5 + $0x22] sm:$0x3]  ;;  %v59_v27 = vmul.f32 %v54_v16, %v54_v16  ;;  %v92_v29 = vld [vmem:[#allocation5 + $0x32] sm:$0x3]  ;;  %v93_v30 = vsub.f32 %v85_v15, %v89_v24  ;;  %v94_v31 = vsub.f32 %v86_v18, %v90_v25  ;;  %v127_v33 = vld [vmem:[#allocation3 + $0x14] sm:$0x3] }
  0x2f   :  { %v60_v28 = vmul.f32 %v55_v17, %v55_v17  ;;  %v95_v35 = vsub.f32 %v87_v19, %v91_v26  ;;  %v96_v36 = vsub.f32 %v88_v20, %v92_v29  ;;  %v128_v37 = vld [vmem:[#allocation3 + $0x24] sm:$0x3]  ;;  %v129_v38 = vld [vmem:[#allocation3 + $0x34] sm:$0x3]  ;;  %v167_v51 = vld [vmem:[#allocation3 + $0x6] sm:$0x3] }
  0x30   :  { %v65_v34 = vcombine.low %v57_v21, %v58_v22  ;;  %v130_v39 = vld [vmem:[#allocation5 + $0x4] sm:$0x3]  ;;  %v98_v41 = vmul.f32 %v93_v30, %v93_v30  ;;  %v99_v42 = vmul.f32 %v94_v31, %v94_v31  ;;  %v131_v43 = vld [vmem:[#allocation5 + $0x14] sm:$0x3]  ;;  %v168_v52 = vld [vmem:[#allocation3 + $0x16] sm:$0x3] }
  0x31   :  { %v66_v40 = vcombine.low %v59_v27, %v60_v28  ;;  %v132_v44 = vld [vmem:[#allocation5 + $0x24] sm:$0x3]  ;;  %v133_v45 = vld [vmem:[#allocation5 + $0x34] sm:$0x3]  ;;  %v134_v46 = vsub.f32 %v126_v32, %v130_v39  ;;  %v100_v48 = vmul.f32 %v95_v35, %v95_v35  ;;  %v101_v49 = vmul.f32 %v96_v36, %v96_v36  ;;  %v169_v53 = vld [vmem:[#allocation3 + $0x26] sm:$0x3] }
  0x32   :  { %v73_v47 = vrot.slane %v65_v34, %v519_v23  ;;  %v135_v50 = vsub.f32 %v127_v33, %v131_v43  ;;  %v106_v55 = vcombine.low %v98_v41, %v99_v42  ;;  %v136_v56 = vsub.f32 %v128_v37, %v132_v44  ;;  %v170_v58 = vld [vmem:[#allocation3 + $0x36] sm:$0x3]  ;;  %v171_v59 = vld [vmem:[#allocation5 + $0x6] sm:$0x3]  ;;  %v208_v3 = vld [vmem:[#allocation3 + $0x8] sm:$0x3] }
  0x33   :  { %v80_v54 = vrot.slane %v66_v40, %v519_v23  ;;  %v137_v57 = vsub.f32 %v129_v38, %v133_v45  ;;  %v172_v60 = vld [vmem:[#allocation5 + $0x16] sm:$0x3]  ;;  %v107_v61 = vcombine.low %v100_v48, %v101_v49  ;;  %v139_v62 = vmul.f32 %v134_v46, %v134_v46  ;;  %v173_v0 = vld [vmem:[#allocation5 + $0x26] sm:$0x3]  ;;  %v209_v8 = vld [vmem:[#allocation3 + $0x18] sm:$0x3] }
  0x34   :  { %v140_v63 = vmul.f32 %v135_v50, %v135_v50  ;;  %v174_v1 = vld [vmem:[#allocation5 + $0x36] sm:$0x3]  ;;  %v175_v2 = vsub.f32 %v167_v51, %v171_v59  ;;  %v114_v5 = vrot.slane %v106_v55, %v519_v23  ;;  %v141_v6 = vmul.f32 %v136_v56, %v136_v56  ;;  %v210_v9 = vld [vmem:[#allocation3 + $0x28] sm:$0x3]  ;;  %v213_v15 = vld [vmem:[#allocation5 + $0x18] sm:$0x3] }
  0x35   :  { %v81_v4 = vcombine.low %v73_v47, %v80_v54  ;;  %v142_v7 = vmul.f32 %v137_v57, %v137_v57  ;;  %v121_v10 = vrot.slane %v107_v61, %v519_v23  ;;  %v176_v12 = vsub.f32 %v168_v52, %v172_v60  ;;  %v212_v14 = vld [vmem:[#allocation5 + $0x8] sm:$0x3]  ;;  %v211_v20 = vld [vmem:[#allocation3 + $0x38] sm:$0x3]  ;;  %v249_v28 = vld [vmem:[#allocation3 + $0xa] sm:$0x3] }
  0x36   :  { %v147_v11 = vcombine.low %v139_v62, %v140_v63  ;;  %v177_v13 = vsub.f32 %v169_v53, %v173_v0  ;;  %v214_v16 = vld [vmem:[#allocation5 + $0x28] sm:$0x3]  ;;  %v178_v18 = vsub.f32 %v170_v58, %v174_v1  ;;  %v180_v19 = vmul.f32 %v175_v2, %v175_v2  ;;  %v215_v21 = vld [vmem:[#allocation5 + $0x38] sm:$0x3]  ;;  %v250_v33 = vld [vmem:[#allocation3 + $0x1a] sm:$0x3] }
  0x37   :  { %v148_v17 = vcombine.low %v141_v6, %v142_v7  ;;  %v216_v22 = vsub.f32 %v208_v3, %v212_v14  ;;  %v122_v24 = vcombine.low %v114_v5, %v121_v10  ;;  %v181_v26 = vmul.f32 %v176_v12, %v176_v12  ;;  %v253_v34 = vld [vmem:[#allocation5 + $0xa] sm:$0x3]  ;;  %v254_v35 = vld [vmem:[#allocation5 + $0x1a] sm:$0x3]  ;;  %v290_v52 = vld [vmem:[#allocation3 + $0xc] sm:$0x3] }
  0x38   :  { %v155_v25 = vrot.slane %v147_v11, %v519_v23  ;;  %v182_v27 = vmul.f32 %v177_v13, %v177_v13  ;;  %v183_v30 = vmul.f32 %v178_v18, %v178_v18  ;;  %v217_v31 = vsub.f32 %v209_v8, %v213_v15  ;;  %v251_v40 = vld [vmem:[#allocation3 + $0x2a] sm:$0x3]  ;;  %v252_v46 = vld [vmem:[#allocation3 + $0x3a] sm:$0x3]  ;;  %v294_v53 = vld [vmem:[#allocation5 + $0xc] sm:$0x3] }
  0x39   :  { %v162_v29 = vrot.slane %v148_v17, %v519_v23  ;;  %v218_v32 = vsub.f32 %v210_v9, %v214_v16  ;;  %v124_v36 = vadd.f32 %v122_v24, %v81_v4  ;;  %v188_v37 = vcombine.low %v180_v19, %v181_v26  ;;  %v255_v41 = vld [vmem:[#allocation5 + $0x2a] sm:$0x3]  ;;  %v256_v47 = vld [vmem:[#allocation5 + $0x3a] sm:$0x3]  ;;  %v291_v58 = vld [vmem:[#allocation3 + $0x1c] sm:$0x3] }
  0x3a   :  { %v219_v38 = vsub.f32 %v211_v20, %v215_v21  ;;  %v221_v39 = vmul.f32 %v216_v22, %v216_v22  ;;  %v189_v43 = vcombine.low %v182_v27, %v183_v30  ;;  %v222_v44 = vmul.f32 %v217_v31, %v217_v31  ;;  %v292_v59 = vld [vmem:[#allocation3 + $0x2c] sm:$0x3]  ;;  %v295_v60 = vld [vmem:[#allocation5 + $0x1c] sm:$0x3]  ;;  %v331_v8 = vld [vmem:[#allocation3 + $0xe] sm:$0x3] }
  0x3b   :  { %v163_v42 = vcombine.low %v155_v25, %v162_v29  ;;  %v223_v45 = vmul.f32 %v218_v32, %v218_v32  ;;  %v196_v48 = vrot.slane %v188_v37, %v519_v23  ;;  %v257_v50 = vsub.f32 %v249_v28, %v253_v34  ;;  %v293_v1 = vld [vmem:[#allocation3 + $0x3c] sm:$0x3]  ;;  %v296_v2 = vld [vmem:[#allocation5 + $0x2c] sm:$0x3]  ;;  %v332_v13 = vld [vmem:[#allocation3 + $0x1e] sm:$0x3] }
  0x3c   :  { %v224_v49 = vmul.f32 %v219_v38, %v219_v38  ;;  %v258_v51 = vsub.f32 %v250_v33, %v254_v35  ;;  %v203_v55 = vrot.slane %v189_v43, %v519_v23  ;;  %v229_v56 = vcombine.low %v221_v39, %v222_v44  ;;  %v297_v3 = vld [vmem:[#allocation5 + $0x3c] sm:$0x3]  ;;  %v335_v14 = vld [vmem:[#allocation5 + $0xe] sm:$0x3]  ;;  %v336_v15 = vld [vmem:[#allocation5 + $0x1e] sm:$0x3] }
  0x3d   :  { %v165_v54 = vadd.f32 %v163_v42, %v124_v36  ;;  %v259_v57 = vsub.f32 %v251_v40, %v255_v41  ;;  %v260_v62 = vsub.f32 %v252_v46, %v256_v47  ;;  %v262_v63 = vmul.f32 %v257_v50, %v257_v50  ;;  %v333_v20 = vld [vmem:[#allocation3 + $0x2e] sm:$0x3]  ;;  %v334_v27 = vld [vmem:[#allocation3 + $0x3e] sm:$0x3] }
  0x3e   :  { %v230_v61 = vcombine.low %v223_v45, %v224_v49  ;;  %v263_v0 = vmul.f32 %v258_v51, %v258_v51  ;;  %v204_v4 = vcombine.low %v196_v48, %v203_v55  ;;  %v237_v5 = vrot.slane %v229_v56, %v519_v23  ;;  %v337_v21 = vld [vmem:[#allocation5 + $0x2e] sm:$0x3]  ;;  %v338_v28 = vld [vmem:[#allocation5 + $0x3e] sm:$0x3] }
  0x3f   :  { %v264_v6 = vmul.f32 %v259_v57, %v259_v57  ;;  %v298_v7 = vsub.f32 %v290_v52, %v294_v53  ;;  %v265_v10 = vmul.f32 %v260_v62, %v260_v62  ;;  %v299_v12 = vsub.f32 %v291_v58, %v295_v60 }
  0x40   :  { %v244_v9 = vrot.slane %v230_v61, %v519_v23  ;;  %v270_v11 = vcombine.low %v262_v63, %v263_v0  ;;  %v206_v16 = vadd.f32 %v204_v4, %v165_v54  ;;  %v300_v17 = vsub.f32 %v292_v59, %v296_v2 }
  0x41   :  { %v301_v18 = vsub.f32 %v293_v1, %v297_v3  ;;  %v303_v19 = vmul.f32 %v298_v7, %v298_v7  ;;  %v271_v24 = vcombine.low %v264_v6, %v265_v10  ;;  %v304_v26 = vmul.f32 %v299_v12, %v299_v12 }
  0x42   :  { %v245_v22 = vcombine.low %v237_v5, %v244_v9  ;;  %v278_v25 = vrot.slane %v270_v11, %v519_v23  ;;  %v305_v29 = vmul.f32 %v300_v17, %v300_v17  ;;  %v339_v31 = vsub.f32 %v331_v8, %v335_v14 }
  0x43   :  { %v306_v30 = vmul.f32 %v301_v18, %v301_v18  ;;  %v340_v32 = vsub.f32 %v332_v13, %v336_v15  ;;  %v285_v34 = vrot.slane %v271_v24, %v519_v23  ;;  %v311_v35 = vcombine.low %v303_v19, %v304_v26 }
  0x44   :  { %v247_v33 = vadd.f32 %v245_v22, %v206_v16  ;;  %v341_v36 = vsub.f32 %v333_v20, %v337_v21  ;;  %v342_v38 = vsub.f32 %v334_v27, %v338_v28  ;;  %v344_v39 = vmul.f32 %v339_v31, %v339_v31 }
  0x45   :  { %v312_v37 = vcombine.low %v305_v29, %v306_v30  ;;  %v345_v40 = vmul.f32 %v340_v32, %v340_v32  ;;  %v286_v41 = vcombine.low %v278_v25, %v285_v34  ;;  %v319_v42 = vrot.slane %v311_v35, %v519_v23 }
  0x46   :  { %v346_v43 = vmul.f32 %v341_v36, %v341_v36  ;;  %v347_v45 = vmul.f32 %v342_v38, %v342_v38 }
  0x47   :  { %v326_v44 = vrot.slane %v312_v37, %v519_v23  ;;  %v352_v46 = vcombine.low %v344_v39, %v345_v40  ;;  %v288_v47 = vadd.f32 %v286_v41, %v247_v33 }
  0x48   :  { %v353_v49 = vcombine.low %v346_v43, %v347_v45 }
  0x49   :  { %v327_v48 = vcombine.low %v319_v42, %v326_v44  ;;  %v360_v50 = vrot.slane %v352_v46, %v519_v23 }
  0x4a   :  { %v367_v52 = vrot.slane %v353_v49, %v519_v23 }
  0x4b   :  { %v329_v51 = vadd.f32 %v327_v48, %v288_v47 }
  0x4c   :  { %v368_v53 = vcombine.low %v360_v50, %v367_v52 }
  0x4e   :  { %v370_v54 = vadd.f32 %v368_v53, %v329_v51 }
  0x50   :  { %376 = vadd.xlane.f32.xlu0 %v370_v54 }
  0xdd   :  { %v377_v55 = vpop.xlane.xlu0 %376 }
  0xde   :  { %v378_v56 = vmul.f32 0.0009765625, %v377_v55 }
  0xe0   :  { %380 = vst.msk [vmem:[#allocation7] sm:$0xff] %vm379_vm0, %v378_v56 }
  0xe7   :  { %v398_v57 = vld [vmem:[#allocation7] sm:$0x3] }
  0xe8   :  { %399 = vst [vmem:[%s542_s2] sm:$0x3] %v398_v57 }
  0xe9   :  { %416 = vsyncpa [#allocation4], 1 }
  0xea   :  { %417 = vsyncpa [#allocation6], 1 }

</bundles_post_ra>
